<compile_context>
chip_gen: v7x
topology: tpu7x:2x2x1
jax: 0.10.0
libtpu: 0.0.40
codegen_flags: <defaults>
</compile_context>

<pallas_src>
import functools

import numpy as np
import jax
import jax.numpy as jnp
from jax.experimental import pallas as pl
from jax.experimental.pallas import tpu as pltpu


_LANES = 128


def _int_pow(v, n):
    """v ** n for a small positive integer n via squaring (VPU multiplies only)."""
    result = None
    base = v
    while True:
        if n & 1:
            result = base if result is None else result * base
        n >>= 1
        if n == 0:
            return result
        base = base * base


def _gem_kernel(p_ref, x_ref, o_ref, *, eps, hw, inv_hw, p_static, p_int,
                math_dtype):
    # p_ref : SMEM scalar-prefetch ref, shape (1,) float32 (ignored if p_static)
    # x_ref : VMEM tile (ROW_TILE, hw) in the input's native dtype
    # o_ref : VMEM tile (1, 1, ROW_TILE) -- lane-dense per-row results
    n_full = hw // _LANES
    tail = hw - n_full * _LANES

    def powed(start, width):
        """clamp(min=eps) ** p for a lane-aligned (ROW_TILE, width) chunk.

        Returned in f32 so the chunk accumulation stays exact on the VPU.
        """
        v = x_ref[:, pl.ds(start, width)]
        if p_int is not None:
            # Integer exponent (default p=3): VPU multiplies only, optionally in
            # bf16 (native bf16 VALU on v6e/v7x) to halve vreg-ops per element.
            v = v.astype(math_dtype)
            v = jnp.maximum(v, eps)
            v = _int_pow(v, p_int)
            return v.astype(jnp.float32)
        # General exponent: x**p == exp(p * log(x)) for x > 0, kept in f32.
        v = jnp.maximum(v.astype(jnp.float32), eps)
        pval = p_static if p_static is not None else p_ref[0]
        return jnp.exp(pval * jnp.log(v))

    def lane_sum(mat, width):
        """(ROW_TILE, width<=128) f32 -> lane-dense (1, ROW_TILE) row sums.

        A tiny K<=128 MXU contraction; the O(H*W) reduction already happened on
        the VPU, so the f32 multi-pass MXU ingest here is negligible.
        """
        ones_row = jnp.ones((1, width), jnp.float32)
        return jax.lax.dot_general(
            ones_row, mat,
            dimension_numbers=(((1,), (1,)), ((), ())),
            preferred_element_type=jnp.float32)

    row_sum = None
    if n_full > 0:
        acc = powed(0, _LANES)
        if 1 < n_full <= 16:
            # Short chunk counts: static unroll (full LLO scheduler visibility).
            for c in range(1, n_full):
                acc = acc + powed(c * _LANES, _LANES)
        elif n_full > 16:
            def body(c, a):
                start = pl.multiple_of(c * _LANES, _LANES)
                return a + powed(start, _LANES)
            acc = jax.lax.fori_loop(1, n_full, body, acc)
        row_sum = lane_sum(acc, _LANES)
    if tail > 0:
        t = lane_sum(powed(n_full * _LANES, tail), tail)
        row_sum = t if row_sum is None else row_sum + t

    mean = row_sum * inv_hw                      # avg_pool over the full (H, W)
    if p_int == 1:
        y = mean
    elif p_int == 2:
        y = jnp.sqrt(mean)
    else:
        inv_p = (1.0 / p_static) if p_static is not None else (1.0 / p_ref[0])
        y = jnp.exp(jnp.log(mean) * inv_p)       # mean ** (1/p), mean > 0
    o_ref[0] = y.astype(o_ref.dtype)


def _default_block_bytes():
    """Per-input-buffer DMA block target, per chip generation."""
    try:
        info = pltpu.get_tpu_info()
        vmem = getattr(info, "vmem_capacity_bytes", None)
        if vmem is not None and vmem <= 96 * 1024 * 1024:
            # v7x-class core (64 MiB VMEM, ~3.2 TB/s HBM): bigger blocks so DMA
            # time dominates the ~0.35 us per-grid-step overhead.  Double
            # buffered 12 MiB still fits the 32 MiB default scoped limit.
            return 6 * 1024 * 1024
    except Exception:
        pass
    # v5e/v6e: 2 MiB already amortises the step cost at <=1.4 TB/s and stays
    # well inside the 16/32 MiB default scoped-VMEM limits when double-buffered.
    return 2 * 1024 * 1024


def _pick_row_tile(rows, hw, itemsize, target_bytes, min_bytes=1 << 20,
                   min_blocks=8):
    """Row block size: as large as the VMEM budget allows, but keep >= min_blocks
    pipelined grid steps when there is enough work, and never drop a block below
    ~min_bytes of input."""
    bpr = max(1, hw * itemsize)
    cap = max(8, target_bytes // bpr)                 # VMEM per-buffer target
    floor = max(8, min_bytes // bpr)                  # keep DMAs >= ~1 MiB
    want = max(floor, pl.cdiv(rows, min_blocks))      # >= min_blocks grid steps
    t = min(cap, want)
    if t >= 128:
        t = (t // 128) * 128       # full-lane output store / full MXU N tile
    else:
        t = max(8, (t // 8) * 8)   # huge hw: fall back to sublane granularity
    if t >= rows:
        return rows                # single block; block dim == array dim is legal
    return t


def gem_forward(x, p=3.0, eps=1e-6, *, block_bytes=None, bf16_elementwise=None):
    """GeM pooling.  x: (B, C, H, W) -> (B, C).

    Pass p as a Python float (e.g. 3.0) to guarantee the integer fast path under
    jit; a traced / device-array p uses the general exp(p*log(x)) path via SMEM.
    """
    B, C, H, W = x.shape
    hw = H * W
    rows = B * C

    x2 = x.reshape(rows, hw)                     # no dtype cast, no pad copy
    itemsize = jnp.dtype(x.dtype).itemsize
    if block_bytes is None:
        block_bytes = _default_block_bytes()
    row_tile = _pick_row_tile(rows, hw, itemsize, block_bytes)
    num_blocks = pl.cdiv(rows, row_tile)

    # Static specialisation of p (no host sync: only Python/numpy scalars are
    # resolved here; jax arrays / tracers go through the SMEM prefetch path).
    p_static = None
    if isinstance(p, (int, float)):
        p_static = float(p)
    elif isinstance(p, (np.ndarray, np.generic)) and np.size(p) == 1:
        p_static = float(np.asarray(p).reshape(-1)[0])

    p_int = None
    if (p_static is not None and p_static > 0 and p_static == round(p_static)
            and p_static <= 8):
        p_int = int(round(p_static))

    if bf16_elementwise is None:
        # v6e/v7x have native bf16 VALU; pass bf16_elementwise=False on v5e or
        # when the ~0.5% relative error on x**p is not acceptable.
        bf16_elementwise = (x.dtype == jnp.bfloat16)
    math_dtype = (jnp.bfloat16
                  if (bf16_elementwise and p_int is not None
                      and x.dtype == jnp.bfloat16)
                  else jnp.float32)

    if p_static is not None:
        p_arr = jnp.full((1,), p_static, jnp.float32)
    else:
        p_arr = jnp.asarray(p, jnp.float32).reshape(1)

    kernel = functools.partial(
        _gem_kernel, eps=float(eps), hw=hw, inv_hw=1.0 / hw,
        p_static=p_static, p_int=p_int, math_dtype=math_dtype)

    # TODO(synk): for hw < 128 (e.g. 7x7 backbone maps) a channels-on-lanes
    # remap would recover the ~2.6x lane/DMA waste; for hw ~1e6 add a second
    # "arbitrary" grid axis over hw with a VMEM accumulator (pl.when init/fin).
    out = pl.pallas_call(
        kernel,
        out_shape=jax.ShapeDtypeStruct((num_blocks, 1, row_tile), x.dtype),
        grid_spec=pltpu.PrefetchScalarGridSpec(
            num_scalar_prefetch=1,                       # p lives in SMEM
            grid=(num_blocks,),
            in_specs=[
                pl.BlockSpec((row_tile, hw), lambda i, p_ref: (i, 0)),
            ],
            out_specs=pl.BlockSpec((1, 1, row_tile), lambda i, p_ref: (i, 0, 0)),
        ),
        compiler_params=pltpu.CompilerParams(
            dimension_semantics=("parallel",)),
    )(p_arr, x2)

    # (num_blocks, 1, row_tile) -> flat row order; drop ragged-tail garbage rows.
    return out.reshape(num_blocks * row_tile)[:rows].reshape(B, C)


def gem_reference(x, p, eps=1e-6):
    """Pure-JAX reference mirroring the PyTorch forward."""
    pv = jnp.asarray(p, dtype=jnp.float32).reshape(-1)[0]
    xf = x.astype(jnp.float32)
    y = jnp.mean(jnp.maximum(xf, eps) ** pv, axis=(-2, -1)) ** (1.0 / pv)
    return y  # (B, C)


if __name__ == "__main__":
    key = jax.random.PRNGKey(0)
    eps = 1e-6

    # Primary shape from the module's typical usage.
    B, C, H, W = 2, 4, 16, 16
    x = jax.random.normal(key, (B, C, H, W), dtype=jnp.float32)

    # 1) Default GeM parameter p = 3 passed as a static float (integer VPU path).
    y3 = jax.block_until_ready(gem_forward(x, 3.0, eps))
    y3_ref = gem_reference(x, 3.0, eps)
    assert y3.shape == (B, C), y3.shape
    assert jnp.allclose(y3, y3_ref, rtol=1e-5, atol=1e-5)

    # 2) Static non-integer p (baked exp(p*log(x)) path).
    y25 = jax.block_until_ready(gem_forward(x, 2.5, eps))
    assert jnp.allclose(y25, gem_reference(x, 2.5, eps), rtol=1e-5, atol=1e-5)

    # 3) p as a device array (dynamic SMEM scalar-prefetch path, no host sync).
    p_dev = jnp.ones((1,), dtype=jnp.float32) * 3.0
    yd = jax.block_until_ready(gem_forward(x, p_dev, eps))
    assert jnp.allclose(yd, y3_ref, rtol=1e-4, atol=1e-5)

    # 4) hw < 128 (7x7) and hw with a ragged 128-lane tail (12x12): tail path.
    for hh in (7, 12):
        xs = jax.random.normal(jax.random.PRNGKey(1), (2, 4, hh, hh), jnp.float32)
        ys = jax.block_until_ready(gem_forward(xs, 3.0, eps))
        assert jnp.allclose(ys, gem_reference(xs, 3.0, eps), rtol=1e-5, atol=1e-5)

    # 5) Multi-block grid with a ragged tail block (forced small block budget).
    xb = jax.random.normal(jax.random.PRNGKey(2), (2, 300, 16, 16), jnp.float32)
    yb = jax.block_until_ready(gem_forward(xb, 3.0, eps, block_bytes=64 * 1024))
    assert yb.shape == (2, 300)
    assert jnp.allclose(yb, gem_reference(xb, 3.0, eps), rtol=1e-5, atol=1e-5)

    # 6) bf16 input: elementwise math stays in bf16 (looser tolerance by design).
    xh = x.astype(jnp.bfloat16)
    yh = jax.block_until_ready(gem_forward(xh, 3.0, eps))
    yh_ref = gem_reference(xh, 3.0, eps)
    assert jnp.allclose(yh.astype(jnp.float32), yh_ref, rtol=2e-2, atol=1e-3)

    print("KERNEL_OK")
</pallas_src>

<mosaic_0001>
module attributes {stable_mosaic.version = 11 : i64} {
  func.func @_gem_kernel(%arg0: i32, %arg1: memref<1xf32, #tpu.memory_space<smem>>, %arg2: memref<8x256xf32, #tpu.memory_space<vmem>>, %arg3: memref<1x1x8xf32, #tpu.memory_space<vmem>>) attributes {dimension_semantics = [#tpu.dimension_semantics<parallel>], iteration_bounds = array<i64: 1>, scalar_prefetch = 1 : i64, scratch_operands = 0 : i64, tpu.core_type = #tpu.core_type<tc>, window_params = [{transform_indices = @transform_0, window_bounds = array<i64: 8, 256>}, {transform_indices = @transform_1, window_bounds = array<i64: 1, 1, 8>}]} {
    %c0 = arith.constant 0 : index
    %c0_0 = arith.constant 0 : index
    %0 = vector.load %arg2[%c0, %c0_0] : memref<8x256xf32, #tpu.memory_space<vmem>>, vector<8x128xf32>
    %cst = arith.constant 9.99999997E-7 : f32
    %1 = vector.broadcast %cst : f32 to vector<8x128xf32>
    %2 = arith.maximumf %0, %1 : vector<8x128xf32>
    %3 = arith.mulf %2, %2 : vector<8x128xf32>
    %4 = arith.mulf %2, %3 : vector<8x128xf32>
    %c0_1 = arith.constant 0 : index
    %c128 = arith.constant 128 : index
    %5 = vector.load %arg2[%c0_1, %c128] : memref<8x256xf32, #tpu.memory_space<vmem>>, vector<8x128xf32>
    %cst_2 = arith.constant 9.99999997E-7 : f32
    %6 = vector.broadcast %cst_2 : f32 to vector<8x128xf32>
    %7 = arith.maximumf %5, %6 : vector<8x128xf32>
    %8 = arith.mulf %7, %7 : vector<8x128xf32>
    %9 = arith.mulf %7, %8 : vector<8x128xf32>
    %10 = arith.addf %4, %9 : vector<8x128xf32>
    %cst_3 = arith.constant 1.000000e+00 : f32
    %11 = vector.broadcast %cst_3 : f32 to vector<1x128xf32>
    %cst_4 = arith.constant dense<0.000000e+00> : vector<1x8xf32>
    %12 = tpu.matmul %11, %10, %cst_4 {dimension_numbers = #tpu.dot_dimension_numbers<[1], [1], [0], [0], [0, 0, 1, 0], [], []>} : vector<1x128xf32>, vector<8x128xf32>, vector<1x8xf32> -> vector<1x8xf32>
    %cst_5 = arith.constant 3.906250e-03 : f32
    %13 = vector.broadcast %cst_5 : f32 to vector<1x8xf32>
    %14 = arith.mulf %12, %13 : vector<1x8xf32>
    %15 = math.log %14 : vector<1x8xf32>
    %cst_6 = arith.constant 0.333333343 : f32
    %16 = vector.broadcast %cst_6 : f32 to vector<1x8xf32>
    %17 = arith.mulf %15, %16 : vector<1x8xf32>
    %18 = math.exp %17 : vector<1x8xf32>
    %c0_7 = arith.constant 0 : index
    %c0_8 = arith.constant 0 : index
    %c0_9 = arith.constant 0 : index
    %19 = vector.load %arg3[%c0_7, %c0_8, %c0_9] : memref<1x1x8xf32, #tpu.memory_space<vmem>>, vector<1x1x8xf32>
    %20 = vector.shape_cast %19 : vector<1x1x8xf32> to vector<1x8xf32>
    %21 = vector.shape_cast %18 : vector<1x8xf32> to vector<1x1x8xf32>
    tpu.vector_store %arg3[%c0_7, %c0_8, %c0_9], %21 {strides = array<i32>} : memref<1x1x8xf32, #tpu.memory_space<vmem>>, vector<1x1x8xf32>,
    return
  }
  func.func @transform_0(%arg0: i32, %arg1: memref<1xf32, #tpu.memory_space<smem>>) -> (i32, i32) {
    %c0_i32 = arith.constant 0 : i32
    %c0_i32_0 = arith.constant 0 : i32
    return %arg0, %c0_i32 : i32, i32
  }
  func.func @transform_1(%arg0: i32, %arg1: memref<1xf32, #tpu.memory_space<smem>>) -> (i32, i32, i32) {
    %c0_i32 = arith.constant 0 : i32
    %c0_i32_0 = arith.constant 0 : i32
    %c0_i32_1 = arith.constant 0 : i32
    return %arg0, %c0_i32, %c0_i32_0 : i32, i32, i32
  }
}

</mosaic_0001>

<bundles_post_ra>
// kernel: tpu_custom_call.1
= control target key start
LH: loop header
LB: loop body
LE: loop exit
PB: predicated region body
PF: predicated region fallthrough
CT: control target
= control target key end

     0   :  { %8 = vsyncpa [#allocation5], 0  ;;  %s233_s0 = inlined_call_operand.<no memory space> [shape: f32[1], index: 0, kind: input, shape index: {}]   ;;  %s234_s1 = inlined_call_operand.hbm [shape: f32[8,256], index: 1, kind: input, shape index: {}]   ;;  %s235_s2 = inlined_call_operand.hbm [shape: f32[1,1,8], index: 2, kind: output, shape index: {}]  }
   0x1   :  { %9 = vsyncpa [#allocation6], 0  ;;  %s189_s9 = smov [#allocation4]   ;;  %s141_s13 = scalar_lea.hbm %s234_s1, 256 }
   0x2   :  { %s16_s10 = sshll.u32 %s189_s9, 4  ;;  %p142_p0 = scmp.ne.s32.totalorder %s234_s1, %s141_s13  ;;  %s17_s10 = int_to_ptr.vmem [resolvable:$true] %s16_s10 }
   0x3   :  { %p145_p1 = scmp.lt.u32.totalorder %s141_s13, %s234_s1 }
   0x5   :  { %p147_p2 = pnand %p145_p1, %p142_p0 }
   0x7   :  { %150 = shalt.err (!%p147_p2)
}
   0x8   :  { %s151_s17 = scalar_lea.vmem %s17_s10, 256  ;;  %p156_p4 = scmp.lt.s32.totalorder %s17_s10, %s17_s10 }
   0x9   :  { %p152_p3 = scmp.ne.s32.totalorder %s17_s10, %s151_s17  ;;  %p157_p5 = scmp.lt.s32.totalorder %s151_s17, %s151_s17 }
   0xb   :  { %p158_p6 = por %p157_p5, %p156_p4 }
   0xd   :  { %p159_p7 = pnand %p158_p6, %p152_p3 }
   0xf   :  { %162 = shalt.err (!%p159_p7)
}
  0x10   :  { %19 = dma.hbm_to_vmem [thread:$0]  %s234_s1, 256, %s17_s10, [#allocation5]  }
  0x11   :  { %185 = dma.done.wait [#allocation5], 256  }
  0x12   :  { %186 = vsyncadd [#allocation5], 4294967040  ;;  %v190_v0 = vmov 0.0   ;;  %vm191_vm0 = vmmov 0   ;;  %v23_v1 = vld [vmem:[#allocation4] sm:$0xff]  ;;  %v27_v2 = vld [vmem:[#allocation4 + $0x8] sm:$0xff] }
  0x13   :  { %127 = vmatprep.subr.mxu0 %v190_v0  ;;  %129 = vmatprep.mubr.msk.f32.mxu0 %vm191_vm0, %v190_v0  ;;  %v24_v3 = vmax.f32 %v23_v1, 1e-06  ;;  %v28_v4 = vmax.f32 %v27_v2, 1e-06  ;;  %v192_v10 = vmov 1.0   ;;  %s193_s1 = smov [#allocation7]  }
  0x14   :  { %s116_s20 = sshll.u32 %s193_s1, 4  ;;  %vm108_vm1 = vcmask 57344   ;;  %s117_s20 = int_to_ptr.vmem [resolvable:$true] %s116_s20 }
  0x15   :  { %v25_v5 = vmul.f32 %v24_v3, %v24_v3  ;;  %v29_v6 = vmul.f32 %v28_v4, %v28_v4  ;;  %s163_s21 = scalar_lea.vmem %s117_s20, 16  ;;  %s167_s22 = scalar_lea.vmem %s117_s20, 32 }
  0x16   :  { %p164_p8 = scmp.ne.s32.totalorder %s117_s20, %s163_s21  ;;  %p168_p9 = scmp.lt.s32.totalorder %s117_s20, %s117_s20 }
  0x17   :  { %v26_v7 = vmul.f32 %v25_v5, %v24_v3  ;;  %v30_v8 = vmul.f32 %v29_v6, %v28_v4  ;;  %p169_p10 = scmp.lt.s32.totalorder %s167_s22, %s163_s21 }
  0x19   :  { %v31_v9 = vadd.f32 %v30_v8, %v26_v7  ;;  %p170_p11 = por %p169_p10, %p168_p9 }
  0x1b   :  { %128 = vmatpush3.xpose.msra.mxu0 %v31_v9  ;;  %p171_p12 = pnand %p170_p11, %p164_p8 }
  0x1e   :  { %130 = vmatmul.mubr.f32.vlgmr.msra.gmra.mrb[0].mxu0 %v192_v10 }
  0xf1   :  { %v98_v11 = vpop.f32.mrb[0].mxu0 }
  0xf2   :  { %v102_v12 = vmul.f32 0.00390625, %v98_v11  ;;  %v131_v13 = vpop.f32.mrb[1].mxu0 }
  0xf4   :  { %137 = vlog2.f32 %v102_v12 }
  0xfe   :  { %v138_v14 = vpop.eup %137 }
  0xff   :  { %v104_v15 = vmul.f32 0.6931472, %v138_v14 }
 0x101   :  { %v105_v16 = vmul.f32 0.33333334, %v104_v15 }
 0x103   :  { %v106_v17 = vmul.f32 1.442695, %v105_v16 }
 0x105   :  { %139 = vpow2.f32 %v106_v17 }
 0x10f   :  { %v140_v18 = vpop.eup %139 }
 0x110   :  { %109 = vst.msk [vmem:[#allocation7] sm:$0x1] %vm108_vm1, %v140_v18 }
 0x111   :  { %174 = shalt.err (!%p171_p12)
}
 0x112   :  { %s175_s25 = scalar_lea.hbm %s235_s2, 16 }
 0x113   :  { %p176_p13 = scmp.ne.s32.totalorder %s235_s2, %s175_s25  ;;  %p179_p0 = scmp.lt.u32.totalorder %s175_s25, %s235_s2 }
 0x115   :  { %p181_p1 = pnand %p179_p0, %p176_p13 }
 0x117   :  { %184 = shalt.err (!%p181_p1)
}
 0x118   :  { %119 = dma.vmem_to_hbm [thread:$0]  %s117_s20, 16, %s235_s2, [#allocation6]  }
 0x119   :  { %187 = dma.done.wait [#allocation6], 16  }
 0x11a   :  { %188 = vsyncadd [#allocation6], 4294967280 }
 0x11b   :  { %123 = vsyncpa [#allocation5], 1 }
 0x11c   :  { %124 = vsyncpa [#allocation6], 1 }

</bundles_post_ra>
